<compile_context>
chip_gen: v5e
topology: v5e:2x2
jax: 0.10.0
libtpu: 0.0.40
codegen_flags: <defaults>
</compile_context>

<pallas_src>
import functools
import math

import jax
import jax.numpy as jnp
from jax import lax
from jax.experimental import pallas as pl
from jax.experimental.pallas import tpu as pltpu


def _mlp_block_kernel(x_ref, w_ref, b_ref, a_ref, o_ref, *, ctx):
    """One batch tile per grid step, native (batch, channel, time) layout.

    x_ref: (TB, C, L)    input tile (compute dtype)
    w_ref: (ctx, F, C)   Conv1d weight, tap-major: w_ref[k] is an (F, C) slab
    b_ref: (F, 1)        Conv1d bias (f32)
    a_ref: (F, 1)        PReLU per-channel slope (f32)
    o_ref: (TB, F, L)    output tile (out dtype)
    """
    TB, C, L = x_ref.shape
    F = o_ref.shape[1]
    pad = ctx // 2

    # Loop invariants hoisted once (JAX does not CSE iota/broadcast in loops).
    t = lax.broadcasted_iota(jnp.int32, (C, L), 1)   # time index per column
    bias = b_ref[...]                                # (F, 1) f32
    alpha = a_ref[...]                               # (F, 1) f32

    @pl.loop(0, TB)
    def _(b):
        x = x_ref[b]                                 # (C, L), compute dtype
        acc = jnp.zeros((F, L), jnp.float32)
        for k in range(ctx):                         # ctx is small and static
            d = k - pad
            if d == 0:
                tap = x                              # center tap: no roll/mask
            elif d > 0:
                # tap[:, t] = x[:, t + d] if t < L - d else 0   (right zero pad)
                shifted = pltpu.roll(x, shift=L - d, axis=1)
                tap = jnp.where(t < L - d, shifted, jnp.zeros_like(shifted))
            else:
                # tap[:, t] = x[:, t + d] if t >= -d else 0     (left zero pad)
                shifted = pltpu.roll(x, shift=-d, axis=1)
                tap = jnp.where(t >= -d, shifted, jnp.zeros_like(shifted))
            # Per-tap MXU dot, f32 accumulation (MXU is idle-bound here anyway).
            acc = acc + jnp.dot(w_ref[k], tap,
                                preferred_element_type=jnp.float32)
        y = acc + bias                               # (F, L) f32
        y = jnp.where(y >= 0.0, y, alpha * y)        # per-channel PReLU (f32)
        o_ref[b] = y.astype(o_ref.dtype)


def _choose_batch_tile(B, C, F, L, in_itemsize, out_itemsize,
                       target_lanes=16384, vmem_budget_bytes=8 << 20):
    """Largest divisor TB of B such that
       * >= 2 grid steps remain when B >= 2 (v7x dual-TC + double buffering),
       * TB * L stays near `target_lanes` (amortizes ~0.35 us per-step
         overhead without ballooning the block),
       * the double-buffered in+out footprint stays under vmem_budget_bytes
         (safe on v7x's 64 MiB / 32 MiB-scoped VMEM)."""
    best = 1
    for tb in range(1, B + 1):
        if B % tb:
            continue
        if B >= 2 and B // tb < 2:
            continue                                  # keep >= 2 grid steps
        if tb > 1 and tb * L > target_lanes:
            continue                                  # already enough lanes
        if 2 * tb * L * (C * in_itemsize + F * out_itemsize) > vmem_budget_bytes:
            continue                                  # VMEM footprint guard
        best = tb
    return best


def mlp_block_forward(x, weight, bias, prelu_alpha, *, context,
                      compute_dtype=None, out_dtype=None, batch_tile=None):
    """x: (B, C_in, L) -> (B, F, L).

    compute_dtype=jnp.bfloat16: halves matmul-input bytes / doubles MXU rate
    on v6e/v7x (do NOT use on v5e — no bf16 VPU).  out_dtype=jnp.bfloat16:
    nearly halves total HBM traffic if downstream tolerates it.  Defaults keep
    everything in x.dtype (f32) — safe on all generations.
    """
    assert context % 2 == 1, context
    B, C, L = x.shape
    F = weight.shape[0]
    assert context // 2 < L, (context, L)

    compute_dtype = x.dtype if compute_dtype is None else compute_dtype
    out_dtype = x.dtype if out_dtype is None else out_dtype
    in_isz = jnp.dtype(compute_dtype).itemsize
    out_isz = jnp.dtype(out_dtype).itemsize

    TB = batch_tile if batch_tile is not None else _choose_batch_tile(
        B, C, F, L, in_isz, out_isz)
    assert B % TB == 0, (B, TB)

    # Only the tiny, reused weight gets re-laid-out: (F, C, ctx) -> (ctx, F, C).
    w = jnp.transpose(weight, (2, 0, 1)).astype(compute_dtype)
    b2 = bias.reshape(F, 1).astype(jnp.float32)
    a2 = prelu_alpha.reshape(F, 1).astype(jnp.float32)
    x_in = x.astype(compute_dtype)                    # no-op in the f32 path

    kernel = functools.partial(_mlp_block_kernel, ctx=context)

    # VMEM head-room for the double-buffered tiles (clamped to safe defaults).
    est = (2 * TB * L * (C * in_isz + F * out_isz)
           + 2 * context * F * C * in_isz + 4 * F * 4)
    vmem_limit = int(min(max(2 * est, 16 << 20), 32 << 20))

    out = pl.pallas_call(
        kernel,
        out_shape=jax.ShapeDtypeStruct((B, F, L), out_dtype),
        grid_spec=pltpu.PrefetchScalarGridSpec(
            num_scalar_prefetch=0,
            grid=(B // TB,),
            in_specs=[
                pl.BlockSpec((TB, C, L), lambda i: (i, 0, 0)),
                pl.BlockSpec((context, F, C), lambda i: (0, 0, 0)),
                pl.BlockSpec((F, 1), lambda i: (0, 0)),
                pl.BlockSpec((F, 1), lambda i: (0, 0)),
            ],
            out_specs=pl.BlockSpec((TB, F, L), lambda i: (i, 0, 0)),
        ),
        compiler_params=pltpu.CompilerParams(
            dimension_semantics=("parallel",),
            vmem_limit_bytes=vmem_limit,
        ),
    )(x_in, w, b2, a2)
    return out


def reference_forward(x, weight, bias, prelu_alpha, *, context):
    """Pure-JAX reference (Conv1d + per-channel PReLU)."""
    pad = context // 2
    y = lax.conv_general_dilated(
        x, weight,
        window_strides=(1,),
        padding=[(pad, pad)],
        dimension_numbers=("NCH", "OIH", "NCH"),
    )
    y = y + bias.reshape(1, -1, 1)
    a = prelu_alpha.reshape(1, -1, 1)
    return jnp.where(y >= 0.0, y, a * y)


if __name__ == "__main__":
    key = jax.random.PRNGKey(0)
    kx, kw, kb, kx2 = jax.random.split(key, 4)

    # Toy shapes consistent with MLPBlock(ninp=4, fmaps=8, context=3).
    B, ninp, fmaps, L, context = 2, 4, 8, 16, 3

    x = jax.random.normal(kx, (B, ninp, L), dtype=jnp.float32)
    fan_in = ninp * context
    bound = 1.0 / math.sqrt(fan_in)
    weight = jax.random.uniform(kw, (fmaps, ninp, context),
                                minval=-bound, maxval=bound, dtype=jnp.float32)
    bias = jax.random.uniform(kb, (fmaps,),
                              minval=-bound, maxval=bound, dtype=jnp.float32)
    prelu_alpha = jnp.full((fmaps,), 0.25, dtype=jnp.float32)   # nn.PReLU default

    run_f32 = jax.jit(functools.partial(mlp_block_forward, context=context))

    # 1) Toy shape, f32 (exact vs. reference); 2 parallel grid steps (TB=1).
    ref = reference_forward(x, weight, bias, prelu_alpha, context=context)
    out = run_f32(x, weight, bias, prelu_alpha)
    jax.block_until_ready(out)
    assert out.shape == (B, fmaps, L) and out.dtype == jnp.float32
    assert jnp.allclose(out, ref, atol=1e-5, rtol=1e-5)

    # 2) Lane-dense shape (L multiple of 128, multiple grid steps), f32 exact.
    B2, L2 = 4, 256
    x2 = jax.random.normal(kx2, (B2, ninp, L2), dtype=jnp.float32)
    ref2 = reference_forward(x2, weight, bias, prelu_alpha, context=context)
    out2 = run_f32(x2, weight, bias, prelu_alpha)
    jax.block_until_ready(out2)
    assert jnp.allclose(out2, ref2, atol=1e-5, rtol=1e-5)

    # 3) bf16 matmul-input path (v6e/v7x optimization; f32 epilogue).
    run_bf16 = jax.jit(functools.partial(mlp_block_forward, context=context,
                                         compute_dtype=jnp.bfloat16))
    out_bf16 = run_bf16(x2, weight, bias, prelu_alpha)
    jax.block_until_ready(out_bf16)
    assert jnp.allclose(out_bf16, ref2, atol=3e-2, rtol=3e-2)

    # 4) bf16 output option (halves output HBM traffic when tolerated).
    run_bf16_out = jax.jit(functools.partial(mlp_block_forward, context=context,
                                             out_dtype=jnp.bfloat16))
    out_b = run_bf16_out(x2, weight, bias, prelu_alpha)
    jax.block_until_ready(out_b)
    assert out_b.dtype == jnp.bfloat16
    assert jnp.allclose(out_b.astype(jnp.float32), ref2, atol=3e-2, rtol=3e-2)

    print("KERNEL_OK")
</pallas_src>

<mosaic_0001>
module attributes {stable_mosaic.version = 11 : i64} {
  func.func @_mlp_block_kernel(%arg0: i32, %arg1: memref<1x4x16xf32, #tpu.memory_space<vmem>>, %arg2: memref<3x8x4xf32, #tpu.memory_space<vmem>>, %arg3: memref<8x1xf32, #tpu.memory_space<vmem>>, %arg4: memref<8x1xf32, #tpu.memory_space<vmem>>, %arg5: memref<1x8x16xf32, #tpu.memory_space<vmem>>) attributes {dimension_semantics = [#tpu.dimension_semantics<parallel>], iteration_bounds = array<i64: 2>, scalar_prefetch = 0 : i64, scratch_operands = 0 : i64, tpu.core_type = #tpu.core_type<tc>, window_params = [{transform_indices = @transform_0, window_bounds = array<i64: 1, 4, 16>}, {pipeline_mode = #tpu.pipeline_mode<synchronous>, transform_indices = @transform_1, window_bounds = array<i64: 3, 8, 4>}, {pipeline_mode = #tpu.pipeline_mode<synchronous>, transform_indices = @transform_2, window_bounds = array<i64: 8, 1>}, {pipeline_mode = #tpu.pipeline_mode<synchronous>, transform_indices = @transform_3, window_bounds = array<i64: 8, 1>}, {transform_indices = @transform_4, window_bounds = array<i64: 1, 8, 16>}]} {
    %0 = tpu.iota {dimensions = array<i32: 1>} : vector<4x16xi32>
    %c0 = arith.constant 0 : index
    %c0_0 = arith.constant 0 : index
    %1 = vector.load %arg3[%c0, %c0_0] : memref<8x1xf32, #tpu.memory_space<vmem>>, vector<8x1xf32>
    %c0_1 = arith.constant 0 : index
    %c0_2 = arith.constant 0 : index
    %2 = vector.load %arg4[%c0_1, %c0_2] : memref<8x1xf32, #tpu.memory_space<vmem>>, vector<8x1xf32>
    %c0_i32 = arith.constant 0 : i32
    %c1_i32 = arith.constant 1 : i32
    %3 = arith.muli %c0_i32, %c1_i32 : i32
    %c0_i32_3 = arith.constant 0 : i32
    %4 = arith.addi %c0_i32_3, %3 : i32
    %5 = arith.index_cast %4 : i32 to index
    %c0_4 = arith.constant 0 : index
    %c0_5 = arith.constant 0 : index
    %6 = vector.load %arg1[%5, %c0_4, %c0_5] : memref<1x4x16xf32, #tpu.memory_space<vmem>>, vector<1x4x16xf32>
    %7 = vector.shape_cast %6 : vector<1x4x16xf32> to vector<4x16xf32>
    %cst = arith.constant 0.000000e+00 : f32
    %8 = vector.broadcast %cst : f32 to vector<8x16xf32>
    %c1_i32_6 = arith.constant 1 : i32
    %9 = tpu.dynamic_rotate %7 by %c1_i32_6 dim 1 : vector<4x16xf32>, i32 -> vector<4x16xf32>
    %c1_i32_7 = arith.constant 1 : i32
    %10 = vector.broadcast %c1_i32_7 : i32 to vector<4x16xi32>
    %11 = arith.cmpi sge, %0, %10 : vector<4x16xi32>
    %cst_8 = arith.constant 0.000000e+00 : f32
    %12 = vector.broadcast %cst_8 : f32 to vector<4x16xf32>
    %13 = arith.select %11, %9, %12 : vector<4x16xi1>, vector<4x16xf32>
    %c0_9 = arith.constant 0 : index
    %c0_10 = arith.constant 0 : index
    %c0_11 = arith.constant 0 : index
    %14 = vector.load %arg2[%c0_9, %c0_10, %c0_11] : memref<3x8x4xf32, #tpu.memory_space<vmem>>, vector<1x8x4xf32>
    %15 = vector.shape_cast %14 : vector<1x8x4xf32> to vector<8x4xf32>
    %cst_12 = arith.constant dense<0.000000e+00> : vector<8x16xf32>
    %16 = tpu.matmul %15, %13, %cst_12 {dimension_numbers = #tpu.dot_dimension_numbers<[1], [0], [0], [1], [0, 0, 1, 1], [], []>} : vector<8x4xf32>, vector<4x16xf32>, vector<8x16xf32> -> vector<8x16xf32>
    %17 = arith.addf %8, %16 : vector<8x16xf32>
    %c1 = arith.constant 1 : index
    %c0_13 = arith.constant 0 : index
    %c0_14 = arith.constant 0 : index
    %18 = vector.load %arg2[%c1, %c0_13, %c0_14] : memref<3x8x4xf32, #tpu.memory_space<vmem>>, vector<1x8x4xf32>
    %19 = vector.shape_cast %18 : vector<1x8x4xf32> to vector<8x4xf32>
    %cst_15 = arith.constant dense<0.000000e+00> : vector<8x16xf32>
    %20 = tpu.matmul %19, %7, %cst_15 {dimension_numbers = #tpu.dot_dimension_numbers<[1], [0], [0], [1], [0, 0, 1, 1], [], []>} : vector<8x4xf32>, vector<4x16xf32>, vector<8x16xf32> -> vector<8x16xf32>
    %21 = arith.addf %17, %20 : vector<8x16xf32>
    %c15_i32 = arith.constant 15 : i32
    %22 = tpu.dynamic_rotate %7 by %c15_i32 dim 1 : vector<4x16xf32>, i32 -> vector<4x16xf32>
    %c15_i32_16 = arith.constant 15 : i32
    %23 = vector.broadcast %c15_i32_16 : i32 to vector<4x16xi32>
    %24 = arith.cmpi slt, %0, %23 : vector<4x16xi32>
    %cst_17 = arith.constant 0.000000e+00 : f32
    %25 = vector.broadcast %cst_17 : f32 to vector<4x16xf32>
    %26 = arith.select %24, %22, %25 : vector<4x16xi1>, vector<4x16xf32>
    %c2 = arith.constant 2 : index
    %c0_18 = arith.constant 0 : index
    %c0_19 = arith.constant 0 : index
    %27 = vector.load %arg2[%c2, %c0_18, %c0_19] : memref<3x8x4xf32, #tpu.memory_space<vmem>>, vector<1x8x4xf32>
    %28 = vector.shape_cast %27 : vector<1x8x4xf32> to vector<8x4xf32>
    %cst_20 = arith.constant dense<0.000000e+00> : vector<8x16xf32>
    %29 = tpu.matmul %28, %26, %cst_20 {dimension_numbers = #tpu.dot_dimension_numbers<[1], [0], [0], [1], [0, 0, 1, 1], [], []>} : vector<8x4xf32>, vector<4x16xf32>, vector<8x16xf32> -> vector<8x16xf32>
    %30 = arith.addf %21, %29 : vector<8x16xf32>
    %31 = vector.broadcast %1 : vector<8x1xf32> to vector<8x16xf32>
    %32 = arith.addf %30, %31 : vector<8x16xf32>
    %cst_21 = arith.constant 0.000000e+00 : f32
    %33 = vector.broadcast %cst_21 : f32 to vector<8x16xf32>
    %34 = arith.cmpf oge, %32, %33 : vector<8x16xf32>
    %35 = vector.broadcast %2 : vector<8x1xf32> to vector<8x16xf32>
    %36 = arith.mulf %35, %32 : vector<8x16xf32>
    %37 = arith.select %34, %32, %36 : vector<8x16xi1>, vector<8x16xf32>
    %38 = arith.index_cast %4 : i32 to index
    %c0_22 = arith.constant 0 : index
    %c0_23 = arith.constant 0 : index
    %39 = vector.load %arg5[%38, %c0_22, %c0_23] : memref<1x8x16xf32, #tpu.memory_space<vmem>>, vector<1x8x16xf32>
    %40 = vector.shape_cast %39 : vector<1x8x16xf32> to vector<8x16xf32>
    %41 = vector.shape_cast %37 : vector<8x16xf32> to vector<1x8x16xf32>
    tpu.vector_store %arg5[%38, %c0_22, %c0_23], %41 {strides = array<i32>} : memref<1x8x16xf32, #tpu.memory_space<vmem>>, vector<1x8x16xf32>,
    %c1_i32_24 = arith.constant 1 : i32
    return
  }
  func.func @transform_0(%arg0: i32) -> (i32, i32, i32) {
    %c0_i32 = arith.constant 0 : i32
    %c0_i32_0 = arith.constant 0 : i32
    %c0_i32_1 = arith.constant 0 : i32
    return %arg0, %c0_i32, %c0_i32_0 : i32, i32, i32
  }
  func.func @transform_1(%arg0: i32) -> (i32, i32, i32) {
    %c0_i32 = arith.constant 0 : i32
    %c0_i32_0 = arith.constant 0 : i32
    %c0_i32_1 = arith.constant 0 : i32
    %c0_i32_2 = arith.constant 0 : i32
    return %c0_i32, %c0_i32_0, %c0_i32_1 : i32, i32, i32
  }
  func.func @transform_2(%arg0: i32) -> (i32, i32) {
    %c0_i32 = arith.constant 0 : i32
    %c0_i32_0 = arith.constant 0 : i32
    %c0_i32_1 = arith.constant 0 : i32
    return %c0_i32, %c0_i32_0 : i32, i32
  }
  func.func @transform_3(%arg0: i32) -> (i32, i32) {
    %c0_i32 = arith.constant 0 : i32
    %c0_i32_0 = arith.constant 0 : i32
    %c0_i32_1 = arith.constant 0 : i32
    return %c0_i32, %c0_i32_0 : i32, i32
  }
  func.func @transform_4(%arg0: i32) -> (i32, i32, i32) {
    %c0_i32 = arith.constant 0 : i32
    %c0_i32_0 = arith.constant 0 : i32
    %c0_i32_1 = arith.constant 0 : i32
    return %arg0, %c0_i32, %c0_i32_0 : i32, i32, i32
  }
}

</mosaic_0001>

<bundles_post_ra>
// kernel: mlp_block_forward.1
= control target key start
LH: loop header
LB: loop body
LE: loop exit
PB: predicated region body
PF: predicated region fallthrough
CT: control target
= control target key end

     0   :  { %9 = vsyncpa [#allocation3], 0  ;;  %s655_s0 = inlined_call_operand.vmem [shape: f32[2,4,16], index: 0, kind: input, shape index: {}]   ;;  %s656_s1 = inlined_call_operand.vmem [shape: f32[3,8,4], index: 1, kind: input, shape index: {}]   ;;  %s657_s2 = inlined_call_operand.vmem [shape: f32[8,1], index: 2, kind: input, shape index: {}]   ;;  %s658_s3 = inlined_call_operand.vmem [shape: f32[8,1], index: 3, kind: input, shape index: {}]   ;;  %s659_s4 = inlined_call_operand.hbm [shape: f32[2,8,16], index: 4, kind: output, shape index: {}]  }
   0x1   :  { %11 = vsyncpa [#allocation3 + $0x1], 0  ;;  %s549_s15 = smov 0   ;;  %s551_s16 = smov 0  }
   0x2   :  { %s553_s17 = smov 0   ;;  %s555_s18 = smov 0  }
   0x3 LB: > { %s570_s19 = sadd.s32 4294967295, %s518_s18   ;;  %s393_s20 = sadd.s32 4294967294, %s518_s18   ;;  %s518_s18 = sphi %s555_s18, %s665_s18   ;;  %s514_s17 = sphi %s553_s17, %s664_s17   ;;  %s510_s16 = sphi %s551_s16, %s663_s16   ;;  %s506_s15 = sphi %s549_s15, %s662_s15  }
   0x4   : > { %s574_s21 = sadd.s32 1, %s518_s18   ;;  %s113_s22 = sadd.s32 1, %s514_s17 }
   0x5   : > { %s110_s23 = ssub.s32 %s518_s18, %s574_s21  ;;  %p123_p0 = scmp.ne.s32.totalorder %s514_s17, %s510_s16 }
   0x6   : > { %p111_p1 = scmp.eq.s32.totalorder %s110_s23, 0  ;;  %p124_p2 = scmp.eq.s32.totalorder %s570_s19, 1 }
   0x7   : > { %p129_p3 = scmp.ne.s32.totalorder %s510_s16, %s506_s15  ;;  %p130_p4 = scmp.eq.s32.totalorder %s393_s20, 1 }
   0x8   : > { %s585_s24 = scalar_select %p111_p1, %s514_s17, %s113_s22  }
   0x9   : > { %p587_p5 = por %p124_p2, %p123_p0  ;;  %p591_p6 = por %p130_p4, %p129_p3 }
   0xa   : > { %p396_p7 = scmp.ge.s32.totalorder %s518_s18, 1  ;;  %p164_p8 = scmp.lt.s32.totalorder %s518_s18, 3 }
   0xc   : > { %p165_p9 = pnand %p396_p7, %p164_p8 }
   0xd   : > { %p189_p10 = scmp.lt.s32.totalorder (!%p165_p9), %s570_s19, 1  ;;  %s520_s6 = smov (!%p165_p9), 16  }
   0xe   : > { %168 = sbr.rel (%p165_p9) target bundleno = 519 (0x207), region = 36  ;;  %s521_s7 = smov (!%p165_p9), 127  }
   0xf   : > { %s522_s8 = smov (!%p165_p9), 113   ;;  %s408_s30 = sshll.u32 (!%p165_p9), %s570_s19, 3 }
  0x10   : > { %s476_s20 = scalar_lea.hbm (!%p165_p9), %s659_s4, 16 }
  0x13   : > { %s190_s27 = scalar_select %p189_p10, %s570_s19, 1  ;;  %vm198_vm0 = vcmask 1047680   ;;  %vm218_vm1 = vcmask 1043456   ;;  %vm214_vm2 = vcmask 31744   ;;  %v399_v5 = vld [vmem:[%s656_s1 + $0x8] sm:$0xff]  ;;  %v195_v6 = vld [vmem:[%s657_s2] sm:$0xff]  ;;  %v193_v9 = vlaneseq }
  0x14   : > { %v523_v7 = vmov 0   ;;  %v196_v8 = vld [vmem:[%s658_s3] sm:$0xff]  ;;  %v404_v12 = vld [vmem:[%s656_s1 + $0x10] sm:$0xff]  ;;  %vm316_vm6 = vcmask 130048  }
  0x15   : > { %s398_s28 = sshll.u32 %s190_s27, 2  ;;  %454 = vset.pattern.permute.xlu2 %v523_v7  ;;  %455 = vset.pattern.permute.xlu0 %v523_v7  ;;  %v194_v10 = vand.u32 127, %v193_v9  ;;  %v211_v15 = vld [vmem:[%s656_s1] sm:$0xff] }
  0x16   : > { %s192_s5 = scalar_lea.vmem %s655_s0, %s398_s28  ;;  %304 = vperm.xlu2 %454, %v195_v6   ;;  %s186_s28 = sand.u32 1, %s510_s16  }
  0x17   : > { %v197_v0 = vld [vmem:[%s192_s5] sm:$0xf]  ;;  %vm268_vm3 = vcmp.lt.s32.totalorder %v194_v10, 15  ;;  %vm205_vm4 = vcmp.ge.s32.totalorder %v194_v10, 1  ;;  %s397_s29 = sshll.u32 %s186_s28, 3  ;;  %s319_s19 = scalar_lea.sflag [#allocation3], %s186_s28 }
  0x18   : > { %199 = vrot.lane.b32.xlu0 %v197_v0, %s520_s6  ;;  %400 = vmatpush.msk.msra.mxu0 %vm218_vm1, %v197_v0 }
  0x19   : > { %401 = vmatmul.msk.f32.vlgmr.msra.gmra.mxu0 %vm214_vm2, %v399_v5 }
  0x1e   : > { %311 = vperm.xlu2 %454, %v196_v8  }
  0x70   : > { %v305_v17 = vpop.permute.xlu2 %304 }
  0x78   : > { %v312_v24 = vpop.permute.xlu2 %311 }
  0x8a   : > { %v200_v1 = vpop.permute.xlu0 %199 }
  0x8b   : > { %v201_v2 = vsel %vm198_vm0, %v200_v1, %v197_v0 }
  0x8c   : > { %202 = vrot.lane.b32.xlu0 %v201_v2, %s520_s6 }
  0x96   : > { %v239_v18 = vpop.f32.mrf.mxu0 }
  0xfe   : > { %v203_v3 = vpop.permute.xlu0 %202 }
  0xff   : > { %v204_v4 = vsel %vm198_vm0, %v203_v3, %v197_v0 }
 0x100   : > { %269 = vrot.lane.b32.xlu1 %v204_v4, %s521_s7  ;;  %s329_s7 = scalar_lea.hbm %s659_s4, %s408_s30 }
 0x101   : > { %s333_s10 = sshll.u32 %s329_s7, 4  ;;  %s334_s10 = int_to_ptr.hbm [resolvable:$true] %s333_s10 }
 0x102   : > { %s470_s11 = sshra.s32 %s334_s10, 4  ;;  %s471_s11 = int_to_ptr.hbm [resolvable:$true] %s470_s11 }
 0x103   : > { %s472_s12 = scalar_lea.hbm %s471_s11, 8  ;;  %p477_p0 = scmp.lt.s32.totalorder %s471_s11, %s659_s4 }
 0x104   : > { %p473_p11 = scmp.ne.s32.totalorder %s471_s11, %s472_s12  ;;  %p478_p1 = scmp.lt.s32.totalorder %s476_s20, %s472_s12 }
 0x106   : > { %p474_p12 = pnand %p473_p11, %p587_p5  ;;  %p479_p2 = por %p478_p1, %p477_p0 }
 0x108   : > { %207 = vrot.lane.b32.xlu1 %v204_v4, %s522_s8  ;;  %s188_s8 = scalar_lea.vmem [#allocation2], %s397_s29  ;;  %p475_p13 = pneg %p474_p12 }
 0x109   : > { %s331_s9 = sshll.u32 %s188_s8, 4  ;;  %s332_s9 = int_to_ptr.vmem [resolvable:$true] %s331_s9 }
 0x10a   : > { %p480_p3 = pnand %p479_p2, %p475_p13 }
 0x172   : > { %v270_v11 = vpop.permute.xlu1 %269 }
 0x173   : > { %v272_v13 = vsel %vm268_vm3, %v270_v11, 0.0 }
 0x174   : > { %405 = vmatpush.msk.msra.mxu2 %vm218_vm1, %v272_v13 }
 0x175   : > { %406 = vmatmul.msk.f32.vlgmr.msra.gmra.mxu2 %vm214_vm2, %v404_v12 }
 0x17a   : > { %v208_v14 = vpop.permute.xlu1 %207 }
 0x17b   : > { %v210_v16 = vsel %vm205_vm4, %v208_v14, 0.0 }
 0x17c   : > { %402 = vmatpush.msk.msra.mxu1 %vm218_vm1, %v210_v16 }
 0x17d   : > { %403 = vmatmul.msk.f32.vlgmr.msra.gmra.mxu1 %vm214_vm2, %v211_v15 }
 0x1f8   : > { %v298_v20 = vpop.f32.mrf.mxu2 }
 0x1fa   : > { %v265_v19 = vpop.f32.mrf.mxu1 }
 0x1fb   : > { %v266_v21 = vadd.f32 %v265_v19, %v239_v18 }
 0x1fd   : > { %v301_v22 = vadd.f32 %v298_v20, %v266_v21 }
 0x1ff   : > { %v307_v23 = vadd.f32 %v305_v17, %v301_v22 }
 0x201   : > { %vm308_vm5 = vcmp.ge.f32.partialorder %v307_v23, 0.0  ;;  %v314_v25 = vmul.f32 %v312_v24, %v307_v23 }
 0x203   : > { %v315_v26 = vsel %vm308_vm5, %v307_v23, %v314_v25 }
 0x204   : > { %317 = vst.msk [vmem:[%s188_s8] sm:$0xff] %vm316_vm6, %v315_v26 }
 0x205   : > { %483 = shalt.err (!%p480_p3)
}
 0x206   : > { %411 = dma.vmem_to_hbm [thread:$0]  (%p587_p5), %s332_s9, 128, %s334_s10, %s319_s19  }
 0x207 PF: > { %p417_p4 = scmp.ge.s32.totalorder %s518_s18, 2  ;;  %s345_s27 = sand.u32 1, %s506_s15  }
 0x208   : > { %s346_s28 = scalar_lea.sflag [#allocation3], %s345_s27 }
 0x209   : > { %p414_p7 = pnand %p417_p4, %p591_p6 }
 0x20b   : > { %p415_p8 = pneg %p414_p7 }
 0x20d   : > { %501 = dma.done.wait (%p415_p8), %s346_s28, 128  }
 0x20e   : > { %503 = vsyncadd (%p415_p8), %s346_s28, 4294967168  ;;  %p14_p9 = scmp.ge.s32.totalorder %s574_s21, 4   ;;  %s662_s15 = smov %s510_s16 }
 0x20f   : > { %s663_s16 = smov %s514_s17  ;;  %s664_s17 = smov %s585_s24 }
 0x210   : > { %s665_s18 = smov %s574_s21  ;;  %16 = sbr.rel (!%p14_p9) target bundleno = 3 (0x3), region = 73 }
 0x215   :  { %352 = vsyncpa [#allocation3], 1 }
 0x216   :  { %354 = vsyncpa [#allocation3 + $0x1], 1 }

</bundles_post_ra>
